<compile_context>
chip_gen: v5e
topology: v5e:2x2
jax: 0.10.0
libtpu: 0.0.40
codegen_flags: <defaults>
</compile_context>

<pallas_src>
import jax
import jax.numpy as jnp
from jax import lax
from jax.experimental import pallas as pl
from jax.experimental.pallas import tpu as pltpu


# ---------------------------------------------------------------------------
# chunking helpers (keep block shapes legal: last two dims always full dims)
# ---------------------------------------------------------------------------
def _time_chunk(T, max_chunk=16):
    """Largest divisor of T that is <= max_chunk (so T % TC == 0)."""
    for tc in range(min(T, max_chunk), 0, -1):
        if T % tc == 0:
            return tc
    return 1


def _row_chunk(total_rows, max_rows=1024):
    """Row block for the input projection: multiple of 8 dividing total_rows."""
    if total_rows <= max_rows:
        return total_rows
    for rc in range(max_rows - max_rows % 8, 7, -8):
        if total_rows % rc == 0:
            return rc
    return total_rows  # fall back to one big block


# ---------------------------------------------------------------------------
# Kernel 1: hoisted input projection for BOTH directions.
#   gx_fwd = x @ W_ih_f^T + (b_ih_f + b_hh_f)
#   gx_bwd = x @ W_ih_b^T + (b_ih_b + b_hh_b)
# One MXU-friendly matmul per direction instead of T tiny ones on the
# serial recurrence path.
# ---------------------------------------------------------------------------
def _proj_kernel(x_ref, wf_ref, wb_ref, bf_ref, bb_ref, gxf_ref, gxb_ref):
    x = x_ref[...].astype(jnp.bfloat16)
    gxf_ref[...] = (
        jnp.dot(x, wf_ref[...], preferred_element_type=jnp.float32) + bf_ref[...])
    gxb_ref[...] = (
        jnp.dot(x, wb_ref[...], preferred_element_type=jnp.float32) + bb_ref[...])


def lstm_input_proj(x_tm, w_ih_f, b_f, w_ih_b, b_b):
    """x_tm: (T, B, D) -> (gx_fwd, gx_bwd), each (T, B, 4H) float32."""
    T, B, D = x_tm.shape
    G = w_ih_f.shape[0]                      # 4H
    R = T * B
    RC = _row_chunk(R)
    nR = R // RC

    x2 = x_tm.reshape(R, D).astype(jnp.float32)
    wf = jnp.transpose(w_ih_f).astype(jnp.bfloat16)   # (D, 4H)
    wb = jnp.transpose(w_ih_b).astype(jnp.bfloat16)
    bf = b_f.reshape(1, G).astype(jnp.float32)
    bb = b_b.reshape(1, G).astype(jnp.float32)

    gxf, gxb = pl.pallas_call(
        _proj_kernel,
        out_shape=(jax.ShapeDtypeStruct((R, G), jnp.float32),
                   jax.ShapeDtypeStruct((R, G), jnp.float32)),
        grid_spec=pltpu.PrefetchScalarGridSpec(
            num_scalar_prefetch=0,
            grid=(nR,),
            in_specs=[
                pl.BlockSpec((RC, D), lambda r: (r, 0)),
                pl.BlockSpec((D, G), lambda r: (0, 0)),
                pl.BlockSpec((D, G), lambda r: (0, 0)),
                pl.BlockSpec((1, G), lambda r: (0, 0)),
                pl.BlockSpec((1, G), lambda r: (0, 0)),
            ],
            out_specs=[
                pl.BlockSpec((RC, G), lambda r: (r, 0)),
                pl.BlockSpec((RC, G), lambda r: (r, 0)),
            ],
        ),
        compiler_params=pltpu.CompilerParams(
            dimension_semantics=("parallel",),
            vmem_limit_bytes=64 * 1024 * 1024),
    )(x2, wf, wb, bf, bb)
    return gxf.reshape(T, B, G), gxb.reshape(T, B, G)


# ---------------------------------------------------------------------------
# Kernel 2: fused bidirectional recurrence over time chunks.
# Grid iterates over chunks of TC timesteps ("arbitrary" = sequential);
# h/c state for both directions lives in VMEM scratch across grid steps.
# The backward direction reads its (pre-projected) gates and writes its output
# through a reversed chunk index_map, so no HBM reversal copies are needed.
# Gate order matches PyTorch nn.LSTM: [i, f, g, o].
# ---------------------------------------------------------------------------
def _bilstm_rec_kernel(gxf_ref, gxb_ref, whf_ref, whb_ref,
                       yf_ref, yb_ref, hn_ref,
                       hf, cf, hb, cb):
    c = pl.program_id(0)
    TC = gxf_ref.shape[0]
    H = hf.shape[-1]

    @pl.when(c == 0)
    def _():
        hf[...] = jnp.zeros_like(hf)
        cf[...] = jnp.zeros_like(cf)
        hb[...] = jnp.zeros_like(hb)
        cb[...] = jnp.zeros_like(cb)

    def _cell(gx, h_prev, c_prev, whh):
        # gx already contains x @ W_ih^T + bias (hoisted projection).
        gates = gx + jnp.dot(h_prev.astype(jnp.bfloat16), whh,
                             preferred_element_type=jnp.float32)      # (B, 4H) f32
        sig = jax.nn.sigmoid(gates)          # full-slab EUP pass, slice afterwards
        i_g = sig[:, 0:H]
        f_g = sig[:, H:2 * H]
        o_g = sig[:, 3 * H:4 * H]
        g_g = jnp.tanh(gates[:, 2 * H:3 * H])
        c_new = f_g * c_prev + i_g * g_g
        h_new = o_g * jnp.tanh(c_new)
        return h_new, c_new

    def step(j, carry):
        # forward direction: original time index  c*TC + j
        h_new, c_new = _cell(gxf_ref[j], hf[...], cf[...], whf_ref[...])
        hf[...] = h_new
        cf[...] = c_new
        yf_ref[j] = h_new
        # backward direction: original time index  T-1 - (c*TC + j)
        jb = TC - 1 - j
        h_newb, c_newb = _cell(gxb_ref[jb], hb[...], cb[...], whb_ref[...])
        hb[...] = h_newb
        cb[...] = c_newb
        yb_ref[jb] = h_newb
        return carry

    lax.fori_loop(0, TC, step, 0, unroll=True)

    @pl.when(c == pl.num_programs(0) - 1)
    def _():
        # final hidden states: fwd after last step, bwd after processing x[0]
        hn_ref[:, 0:H] = hf[...]
        hn_ref[:, H:2 * H] = hb[...]


def bilstm_layer(gxf, gxb, w_hh_f, w_hh_b):
    """gxf/gxb: (T, B, 4H) projected gates; returns (y_fwd, y_bwd, h_n)."""
    T, B, G = gxf.shape
    H = w_hh_f.shape[1]
    TC = _time_chunk(T)
    nC = T // TC

    whf = jnp.transpose(w_hh_f).astype(jnp.bfloat16)   # (H, 4H)
    whb = jnp.transpose(w_hh_b).astype(jnp.bfloat16)

    return pl.pallas_call(
        _bilstm_rec_kernel,
        out_shape=(jax.ShapeDtypeStruct((T, B, H), jnp.float32),
                   jax.ShapeDtypeStruct((T, B, H), jnp.float32),
                   jax.ShapeDtypeStruct((B, 2 * H), jnp.float32)),
        grid_spec=pltpu.PrefetchScalarGridSpec(
            num_scalar_prefetch=0,
            grid=(nC,),
            in_specs=[
                pl.BlockSpec((TC, B, G), lambda c: (c, 0, 0)),
                pl.BlockSpec((TC, B, G), lambda c: (nC - 1 - c, 0, 0)),
                pl.BlockSpec((H, G), lambda c: (0, 0)),
                pl.BlockSpec((H, G), lambda c: (0, 0)),
            ],
            out_specs=[
                pl.BlockSpec((TC, B, H), lambda c: (c, 0, 0)),
                pl.BlockSpec((TC, B, H), lambda c: (nC - 1 - c, 0, 0)),
                pl.BlockSpec((B, 2 * H), lambda c: (0, 0)),
            ],
            scratch_shapes=[pltpu.VMEM((B, H), jnp.float32)] * 4,  # hf, cf, hb, cb
        ),
        compiler_params=pltpu.CompilerParams(
            dimension_semantics=("arbitrary",),
            vmem_limit_bytes=64 * 1024 * 1024),
    )(gxf, gxb, whf, whb)


# ---------------------------------------------------------------------------
# Kernel 3: final Linear layer (whole arrays in VMEM).
# ---------------------------------------------------------------------------
def _fc_kernel(x_ref, w_ref, b_ref, o_ref):
    o_ref[...] = (
        jnp.dot(x_ref[...], w_ref[...], preferred_element_type=jnp.float32)
        + b_ref[...])


def fc(x, w, b):
    """x: (B, F), w: (C, F) PyTorch Linear layout, b: (C,) -> (B, C)."""
    B, F = x.shape
    C = w.shape[0]
    return pl.pallas_call(
        _fc_kernel,
        out_shape=jax.ShapeDtypeStruct((B, C), jnp.float32),
        in_specs=[
            pl.BlockSpec((B, F), lambda: (0, 0)),
            pl.BlockSpec((F, C), lambda: (0, 0)),
            pl.BlockSpec((1, C), lambda: (0, 0)),
        ],
        out_specs=pl.BlockSpec((B, C), lambda: (0, 0)),
    )(x.astype(jnp.float32),
      jnp.transpose(w).astype(jnp.float32),
      b.reshape(1, C).astype(jnp.float32))


# ---------------------------------------------------------------------------
# Parameter init (deterministic, PyTorch-style uniform(-1/sqrt(H), 1/sqrt(H)))
# ---------------------------------------------------------------------------
def init_params(key, input_size, hidden_size, num_layers, num_classes,
                bidirectional=True):
    num_dir = 2 if bidirectional else 1
    n_keys = num_layers * num_dir * 4 + 2
    keys = iter(jax.random.split(key, n_keys))
    bound = 1.0 / jnp.sqrt(hidden_size)

    layers = []
    for l in range(num_layers):
        in_sz = input_size if l == 0 else hidden_size * num_dir
        dirs = []
        for _ in range(num_dir):
            w_ih = jax.random.uniform(next(keys), (4 * hidden_size, in_sz),
                                      minval=-bound, maxval=bound)
            w_hh = jax.random.uniform(next(keys), (4 * hidden_size, hidden_size),
                                      minval=-bound, maxval=bound)
            b_ih = jax.random.uniform(next(keys), (4 * hidden_size,),
                                      minval=-bound, maxval=bound)
            b_hh = jax.random.uniform(next(keys), (4 * hidden_size,),
                                      minval=-bound, maxval=bound)
            dirs.append((w_ih, w_hh, b_ih + b_hh))
        layers.append(dirs)

    fc_bound = 1.0 / jnp.sqrt(hidden_size * num_dir)
    fc_w = jax.random.uniform(next(keys), (num_classes, hidden_size * num_dir),
                              minval=-fc_bound, maxval=fc_bound)
    fc_b = jax.random.uniform(next(keys), (num_classes,),
                              minval=-fc_bound, maxval=fc_bound)
    return {"layers": layers, "fc_w": fc_w, "fc_b": fc_b}


# ---------------------------------------------------------------------------
# LSTMModel.forward equivalent:
#   _, (hn, _) = lstm(x); out = cat(hn[-2], hn[-1]); return fc(out)
# ---------------------------------------------------------------------------
def lstm_model_forward(params, x):
    # x: (B, T, D) batch-first, like PyTorch nn.LSTM(batch_first=True).
    x_tm = jnp.transpose(x, (1, 0, 2)).astype(jnp.float32)   # (T, B, D) time-major
    inp = x_tm
    hn = None
    n_layers = len(params["layers"])
    for li, ((wih_f, whh_f, b_f), (wih_b, whh_b, b_b)) in enumerate(params["layers"]):
        gxf, gxb = lstm_input_proj(inp, wih_f, b_f, wih_b, b_b)   # hoisted x-proj
        yf, yb, hn = bilstm_layer(gxf, gxb, whh_f, whh_b)         # fused bi-LSTM
        if li + 1 < n_layers:
            inp = jnp.concatenate([yf, yb], axis=-1)              # (T, B, 2H)
    # hn == cat(h_n_fwd, h_n_bwd) of the last layer, already shaped (B, 2H)
    return fc(hn, params["fc_w"], params["fc_b"])                 # (B, C)


if __name__ == "__main__":
    B, T = 2, 8
    INPUT_SIZE, HIDDEN_SIZE, NUM_LAYERS, NUM_CLASSES = 16, 32, 2, 10

    key = jax.random.PRNGKey(0)
    k_param, k_x = jax.random.split(key)
    params = init_params(k_param, INPUT_SIZE, HIDDEN_SIZE, NUM_LAYERS,
                         NUM_CLASSES, bidirectional=True)
    x = jax.random.normal(k_x, (B, T, INPUT_SIZE), dtype=jnp.float32)

    out = lstm_model_forward(params, x)
    jax.block_until_ready(out)
    assert out.shape == (B, NUM_CLASSES), out.shape
    print("KERNEL_OK")
</pallas_src>

<mosaic_0001>
module attributes {stable_mosaic.version = 11 : i64} {
  func.func @_proj_kernel(%arg0: i32, %arg1: memref<16x16xf32, #tpu.memory_space<vmem>>, %arg2: memref<16x128xbf16, #tpu.memory_space<vmem>>, %arg3: memref<16x128xbf16, #tpu.memory_space<vmem>>, %arg4: memref<1x128xf32, #tpu.memory_space<vmem>>, %arg5: memref<1x128xf32, #tpu.memory_space<vmem>>, %arg6: memref<16x128xf32, #tpu.memory_space<vmem>>, %arg7: memref<16x128xf32, #tpu.memory_space<vmem>>) attributes {dimension_semantics = [#tpu.dimension_semantics<parallel>], iteration_bounds = array<i64: 1>, scalar_prefetch = 0 : i64, scratch_operands = 0 : i64, tpu.core_type = #tpu.core_type<tc>, window_params = [{transform_indices = @transform_0, window_bounds = array<i64: 16, 16>}, {pipeline_mode = #tpu.pipeline_mode<synchronous>, transform_indices = @transform_1, window_bounds = array<i64: 16, 128>}, {pipeline_mode = #tpu.pipeline_mode<synchronous>, transform_indices = @transform_2, window_bounds = array<i64: 16, 128>}, {pipeline_mode = #tpu.pipeline_mode<synchronous>, transform_indices = @transform_3, window_bounds = array<i64: 1, 128>}, {pipeline_mode = #tpu.pipeline_mode<synchronous>, transform_indices = @transform_4, window_bounds = array<i64: 1, 128>}, {transform_indices = @transform_5, window_bounds = array<i64: 16, 128>}, {transform_indices = @transform_6, window_bounds = array<i64: 16, 128>}]} {
    %c0 = arith.constant 0 : index
    %c0_0 = arith.constant 0 : index
    %0 = vector.load %arg1[%c0, %c0_0] : memref<16x16xf32, #tpu.memory_space<vmem>>, vector<16x16xf32>
    %1 = arith.truncf %0 : vector<16x16xf32> to vector<16x16xbf16>
    %c0_1 = arith.constant 0 : index
    %c0_2 = arith.constant 0 : index
    %2 = vector.load %arg2[%c0_1, %c0_2] : memref<16x128xbf16, #tpu.memory_space<vmem>>, vector<16x128xbf16>
    %cst = arith.constant dense<0.000000e+00> : vector<16x128xf32>
    %3 = tpu.matmul %1, %2, %cst {dimension_numbers = #tpu.dot_dimension_numbers<[1], [0], [0], [1], [0, 0, 1, 1], [], []>} : vector<16x16xbf16>, vector<16x128xbf16>, vector<16x128xf32> -> vector<16x128xf32>
    %c0_3 = arith.constant 0 : index
    %c0_4 = arith.constant 0 : index
    %4 = vector.load %arg4[%c0_3, %c0_4] : memref<1x128xf32, #tpu.memory_space<vmem>>, vector<1x128xf32>
    %5 = vector.broadcast %4 : vector<1x128xf32> to vector<16x128xf32>
    %6 = arith.addf %3, %5 : vector<16x128xf32>
    %c0_5 = arith.constant 0 : index
    %c0_6 = arith.constant 0 : index
    %7 = vector.load %arg6[%c0_5, %c0_6] : memref<16x128xf32, #tpu.memory_space<vmem>>, vector<16x128xf32>
    tpu.vector_store %arg6[%c0_5, %c0_6], %6 {strides = array<i32>} : memref<16x128xf32, #tpu.memory_space<vmem>>, vector<16x128xf32>,
    %c0_7 = arith.constant 0 : index
    %c0_8 = arith.constant 0 : index
    %8 = vector.load %arg3[%c0_7, %c0_8] : memref<16x128xbf16, #tpu.memory_space<vmem>>, vector<16x128xbf16>
    %cst_9 = arith.constant dense<0.000000e+00> : vector<16x128xf32>
    %9 = tpu.matmul %1, %8, %cst_9 {dimension_numbers = #tpu.dot_dimension_numbers<[1], [0], [0], [1], [0, 0, 1, 1], [], []>} : vector<16x16xbf16>, vector<16x128xbf16>, vector<16x128xf32> -> vector<16x128xf32>
    %c0_10 = arith.constant 0 : index
    %c0_11 = arith.constant 0 : index
    %10 = vector.load %arg5[%c0_10, %c0_11] : memref<1x128xf32, #tpu.memory_space<vmem>>, vector<1x128xf32>
    %11 = vector.broadcast %10 : vector<1x128xf32> to vector<16x128xf32>
    %12 = arith.addf %9, %11 : vector<16x128xf32>
    %c0_12 = arith.constant 0 : index
    %c0_13 = arith.constant 0 : index
    %13 = vector.load %arg7[%c0_12, %c0_13] : memref<16x128xf32, #tpu.memory_space<vmem>>, vector<16x128xf32>
    tpu.vector_store %arg7[%c0_12, %c0_13], %12 {strides = array<i32>} : memref<16x128xf32, #tpu.memory_space<vmem>>, vector<16x128xf32>,
    return
  }
  func.func @transform_0(%arg0: i32) -> (i32, i32) {
    %c0_i32 = arith.constant 0 : i32
    %c0_i32_0 = arith.constant 0 : i32
    return %arg0, %c0_i32 : i32, i32
  }
  func.func @transform_1(%arg0: i32) -> (i32, i32) {
    %c0_i32 = arith.constant 0 : i32
    %c0_i32_0 = arith.constant 0 : i32
    %c0_i32_1 = arith.constant 0 : i32
    return %c0_i32, %c0_i32_0 : i32, i32
  }
  func.func @transform_2(%arg0: i32) -> (i32, i32) {
    %c0_i32 = arith.constant 0 : i32
    %c0_i32_0 = arith.constant 0 : i32
    %c0_i32_1 = arith.constant 0 : i32
    return %c0_i32, %c0_i32_0 : i32, i32
  }
  func.func @transform_3(%arg0: i32) -> (i32, i32) {
    %c0_i32 = arith.constant 0 : i32
    %c0_i32_0 = arith.constant 0 : i32
    %c0_i32_1 = arith.constant 0 : i32
    return %c0_i32, %c0_i32_0 : i32, i32
  }
  func.func @transform_4(%arg0: i32) -> (i32, i32) {
    %c0_i32 = arith.constant 0 : i32
    %c0_i32_0 = arith.constant 0 : i32
    %c0_i32_1 = arith.constant 0 : i32
    return %c0_i32, %c0_i32_0 : i32, i32
  }
  func.func @transform_5(%arg0: i32) -> (i32, i32) {
    %c0_i32 = arith.constant 0 : i32
    %c0_i32_0 = arith.constant 0 : i32
    return %arg0, %c0_i32 : i32, i32
  }
  func.func @transform_6(%arg0: i32) -> (i32, i32) {
    %c0_i32 = arith.constant 0 : i32
    %c0_i32_0 = arith.constant 0 : i32
    return %arg0, %c0_i32 : i32, i32
  }
}

</mosaic_0001>

<bundles_post_ra>
// kernel: tpu_custom_call.1
= control target key start
LH: loop header
LB: loop body
LE: loop exit
PB: predicated region body
PF: predicated region fallthrough
CT: control target
= control target key end

     0   :  { %12 = vsyncpa [#allocation3], 0  ;;  %s398_s0 = inlined_call_operand.hbm [shape: f32[16,16], index: 0, kind: input, shape index: {}]   ;;  %s399_s1 = inlined_call_operand.hbm [shape: bf16[16,128], index: 1, kind: input, shape index: {}]   ;;  %s400_s2 = inlined_call_operand.hbm [shape: bf16[16,128], index: 2, kind: input, shape index: {}]   ;;  %s401_s3 = inlined_call_operand.vmem [shape: f32[1,128], index: 3, kind: input, shape index: {}]   ;;  %s402_s4 = inlined_call_operand.vmem [shape: f32[1,128], index: 4, kind: input, shape index: {}]   ;;  %s403_s5 = inlined_call_operand.hbm [shape: f32[16,128], index: 5, kind: output, shape index: {0}]   ;;  %s404_s6 = inlined_call_operand.hbm [shape: f32[16,128], index: 6, kind: output, shape index: {1}]  }
   0x1   :  { %13 = vsyncpa [#allocation6], 0 }
   0x2   :  { %14 = vsyncpa [#allocation4], 0  ;;  %s33_s23 = sshll.u32 %s399_s1, 4  ;;  %s34_s23 = int_to_ptr.hbm [resolvable:$true] %s33_s23 }
   0x3   :  { %15 = vsyncpa [#allocation10], 0  ;;  %s324_s24 = smov [#allocation5]   ;;  %s20_s28 = sshll.u32 %s398_s0, 4  ;;  %s21_s28 = int_to_ptr.hbm [resolvable:$true] %s20_s28 }
   0x4   :  { %s35_s25 = sshll.u32 %s324_s24, 4  ;;  %s325_s29 = smov 64   ;;  %s36_s25 = int_to_ptr.vmem [resolvable:$true] %s35_s25 }
   0x5   :  { %s326_s30 = smov 4   ;;  %s327_s7 = smov [#allocation2]  }
   0x6   :  { %41 = dma.hbm_to_vmem [thread:$0]  %s34_s23, 128, %s36_s25, [#allocation6], %s325_s29, %s325_s29, %s326_s30  }
   0x7   :  { %s22_s8 = sshll.u32 %s327_s7, 4  ;;  %s328_s9 = smov 128   ;;  %s23_s8 = int_to_ptr.vmem [resolvable:$true] %s22_s8 }
   0x8   :  { %s329_s10 = smov 8   ;;  %s46_s12 = sshll.u32 %s400_s2, 4  ;;  %s47_s12 = int_to_ptr.hbm [resolvable:$true] %s46_s12 }
   0x9   :  { %28 = dma.hbm_to_vmem [thread:$0]  %s21_s28, 256, %s23_s8, [#allocation3], %s328_s9, %s328_s9, %s329_s10  }
   0xa   :  { %s330_s13 = smov [#allocation7]  }
   0xb   :  { %s48_s0 = sshll.u32 %s330_s13, 4  ;;  %s49_s0 = int_to_ptr.vmem [resolvable:$true] %s48_s0 }
   0xc   :  { %54 = dma.hbm_to_vmem [thread:$0]  %s47_s12, 128, %s49_s0, [#allocation6], %s325_s29, %s325_s29, %s326_s30  }
   0xd   :  { %316 = dma.done.wait [#allocation3], 256  }
   0xe   :  { %317 = vsyncadd [#allocation3], 4294967040 }
   0xf   :  { %318 = dma.done.wait [#allocation6], 256  }
  0x10   :  { %319 = vsyncadd [#allocation6], 4294967040  ;;  %v183_v0 = vld [vmem:[#allocation5] sm:$0xff]  ;;  %v184_v1 = vld [vmem:[#allocation7] sm:$0xff]  ;;  %vm87_vm0 = vcmask 130048   ;;  %s331_s17 = smov [#allocation8]  }
  0x11   :  { %v72_v2 = vld [vmem:[#allocation2] sm:$0xff]  ;;  %v73_v3 = vld [vmem:[#allocation2 + $0x8] sm:$0xff]  ;;  %98 = vmatpush.bf16.msra.mxu0 %v183_v0  ;;  %126 = vmatpush.bf16.msra.mxu1 %v184_v1  ;;  %s139_s18 = sshll.u32 %s331_s17, 4  ;;  %s141_s21 = sshll.u32 %s403_s5, 4  ;;  %s140_s18 = int_to_ptr.vmem [resolvable:$true] %s139_s18  ;;  %s142_s21 = int_to_ptr.hbm [resolvable:$true] %s141_s21 }
  0x12   :  { %v74_v4 = vpack.c.bf16 %v73_v3, %v72_v2  ;;  %v194_v5 = vld [vmem:[%s401_s3] ss:$0 sm:$0xff]  ;;  %s332_s22 = smov [#allocation9]   ;;  %s154_s25 = sshll.u32 %s404_s6, 4  ;;  %s155_s25 = int_to_ptr.hbm [resolvable:$true] %s154_s25 }
  0x13   :  { %v195_v6 = vld [vmem:[%s402_s4] ss:$0 sm:$0xff]  ;;  %s152_s23 = sshll.u32 %s332_s22, 4  ;;  %s153_s23 = int_to_ptr.vmem [resolvable:$true] %s152_s23 }
  0x14   :  { %177 = vmatmul.msk.bf16.vlgmr.msra.gmra.mxu0 %vm87_vm0, %v74_v4  ;;  %182 = vmatmul.msk.bf16.vlgmr.msra.gmra.mxu1 %vm87_vm0, %v74_v4 }
  0x91   :  { %v100_v7 = vpop.f32.mrf.mxu0  ;;  %v128_v8 = vpop.f32.mrf.mxu1 }
  0x92   :  { %v101_v9 = vadd.f32 %v194_v5, %v100_v7  ;;  %v129_v10 = vadd.f32 %v195_v6, %v128_v8 }
  0x94   :  { %105 = vst [vmem:[#allocation8] sm:$0xff] %v101_v9 }
  0x95   :  { %133 = vst [vmem:[#allocation9] sm:$0xff] %v129_v10 }
  0x99   :  { %v102_v11 = vpop.f32.mrf.mxu0  ;;  %v130_v12 = vpop.f32.mrf.mxu1 }
  0x9a   :  { %v103_v13 = vadd.f32 %v194_v5, %v102_v11  ;;  %v131_v14 = vadd.f32 %v195_v6, %v130_v12 }
  0x9c   :  { %106 = vst [vmem:[#allocation8 + $0x8] sm:$0xff] %v103_v13 }
  0x9d   :  { %134 = vst [vmem:[#allocation9 + $0x8] sm:$0xff] %v131_v14  ;;  %147 = dma.vmem_to_hbm [thread:$0]  %s140_s18, 256, %s142_s21, [#allocation4], %s328_s9, %s328_s9, %s329_s10  }
  0x9e   :  { %160 = dma.vmem_to_hbm [thread:$0]  %s153_s23, 256, %s155_s25, [#allocation10], %s328_s9, %s328_s9, %s329_s10  }
  0x9f   :  { %320 = dma.done.wait [#allocation4], 256  }
  0xa0   :  { %321 = vsyncadd [#allocation4], 4294967040 }
  0xa1   :  { %322 = dma.done.wait [#allocation10], 256  }
  0xa2   :  { %323 = vsyncadd [#allocation10], 4294967040 }
  0xa3   :  { %169 = vsyncpa [#allocation3], 1 }
  0xa4   :  { %170 = vsyncpa [#allocation6], 1 }
  0xa5   :  { %171 = vsyncpa [#allocation4], 1 }
  0xa6   :  { %172 = vsyncpa [#allocation10], 1 }

</bundles_post_ra>
